<compile_context>
chip_gen: v7x
topology: tpu7x:2x2x1
jax: 0.10.0
libtpu: 0.0.40
codegen_flags: <defaults>
</compile_context>

<pallas_src>
import functools

import jax
import jax.numpy as jnp
import numpy as np
from jax.experimental import pallas as pl
from jax.experimental.pallas import tpu as pltpu


# ---------------------------------------------------------------------------
# Kernel
# ---------------------------------------------------------------------------
def _encoder_kernel(x_ref, w_ref, fcw_ref, fcb_ref, out_ref, acc_ref, *, inv_hw):
    """Fused 1x1-conv (coords + bias folded in) + ReLU + avg-pool + fc.

    x_ref   : (Bblk, HWchunk, Cp)  activations with coord/ones channels appended
    w_ref   : (Cp, F)              folded conv weight [wx; wc; cb; 0-pad]
    fcw_ref : (F, OUTp)            fc weight, zero-padded to lane-dense OUTp
    fcb_ref : (1, OUTp)            fc bias, zero-padded
    out_ref : (Bblk, OUTp)
    acc_ref : (Bblk, F) f32        running sum over HW (scratch, persists over j)
    """
    j = pl.program_id(1)

    @pl.when(j == 0)
    def _init():
        acc_ref[...] = jnp.zeros_like(acc_ref)

    bblk, hwc, cp = x_ref.shape
    x = x_ref[...].reshape(bblk * hwc, cp)

    # conv(1x1) over [x, coord_h, coord_w, ones] channels == conv + coords + bias
    feat = jnp.dot(x, w_ref[...], preferred_element_type=jnp.float32)
    feat = jnp.maximum(feat, 0.0)                                   # ReLU

    # partial global-average-pool: accumulate per-image sums over this HW chunk
    acc_ref[...] += feat.reshape(bblk, hwc, -1).sum(axis=1)

    @pl.when(j == pl.num_programs(1) - 1)
    def _finalize():
        pooled = acc_ref[...] * inv_hw                              # mean over HW
        out = jnp.dot(pooled, fcw_ref[...], preferred_element_type=jnp.float32)
        out_ref[...] = (out + fcb_ref[...]).astype(out_ref.dtype)


# ---------------------------------------------------------------------------
# Wrapper
# ---------------------------------------------------------------------------
def _largest_divisor_leq(n, cap):
    for d in range(min(n, cap), 0, -1):
        if n % d == 0:
            return d
    return 1


def _pick_hw_chunk(total, target):
    # largest divisor of `total` that is <= target and (mult of 8 or == total)
    for d in range(min(total, target), 0, -1):
        if total % d == 0 and (d % 8 == 0 or d == total):
            return d
    return total


def encoder_forward(x_nchw, params, *, compute_dtype=jnp.float32):
    B, C, H, W = x_nchw.shape
    wx, wc, cb = params["wx"], params["wc"], params["cb"]
    fcw, fcb = params["fcw"], params["fcb"]
    F_ = wx.shape[1]
    OUT = fcw.shape[1]
    HW = H * W

    # ---- layout plumbing (wrapper-side, cheap) ----------------------------
    # CoordConv channels (torch.linspace(-1,1,1) == -1 handled by jnp.linspace)
    lin_h = jnp.linspace(-1.0, 1.0, H, dtype=jnp.float32)
    lin_w = jnp.linspace(-1.0, 1.0, W, dtype=jnp.float32)
    ch = jnp.broadcast_to(lin_h[:, None], (H, W)).reshape(HW)       # varies with h
    cw = jnp.broadcast_to(lin_w[None, :], (H, W)).reshape(HW)       # varies with w
    coords = jnp.stack([ch, cw], axis=-1)                           # (HW, 2)

    # NCHW -> (B, HW, C); append coord channels + a ones channel (bias fold)
    x_flat = jnp.transpose(x_nchw, (0, 2, 3, 1)).reshape(B, HW, C).astype(jnp.float32)
    coords_b = jnp.broadcast_to(coords[None], (B, HW, 2))
    ones_b = jnp.ones((B, HW, 1), jnp.float32)
    x_aug = jnp.concatenate([x_flat, coords_b, ones_b], axis=-1)    # (B, HW, C+3)

    c_in = C + 3
    c_pad = -(-c_in // 8) * 8                                       # channel pad -> mult of 8
    if c_pad > c_in:
        x_aug = jnp.pad(x_aug, ((0, 0), (0, 0), (0, c_pad - c_in)))

    # Folded conv weight: [wx; wc; cb; zero-pad]  -> single MXU matmul
    w_full = jnp.concatenate([wx, wc, cb], axis=0)                  # (C+3, F)
    if c_pad > c_in:
        w_full = jnp.pad(w_full, ((0, c_pad - c_in), (0, 0)))

    # Lane-dense output: pad fc out-dim to a multiple of 128, slice afterwards
    out_pad = -(-OUT // 128) * 128
    fcw_p = jnp.pad(fcw, ((0, 0), (0, out_pad - OUT))).astype(jnp.float32)
    fcb_p = jnp.pad(fcb, ((0, 0), (0, out_pad - OUT))).astype(jnp.float32)

    # ---- tiling ------------------------------------------------------------
    b_blk = _largest_divisor_leq(B, 8)                  # images per grid step
    # keep the live (rows, F) f32 feat tile around <= ~64 vregs (256 KiB @ F=512)
    hw_chunk = _pick_hw_chunk(HW, max(8, 128 // b_blk))

    kernel = functools.partial(_encoder_kernel, inv_hw=1.0 / float(HW))

    grid_spec = pltpu.PrefetchScalarGridSpec(
        num_scalar_prefetch=0,
        grid=(B // b_blk, HW // hw_chunk),
        in_specs=[
            pl.BlockSpec((b_blk, hw_chunk, c_pad), lambda i, j: (i, j, 0)),
            pl.BlockSpec((c_pad, F_), lambda i, j: (0, 0)),
            pl.BlockSpec((F_, out_pad), lambda i, j: (0, 0)),
            pl.BlockSpec((1, out_pad), lambda i, j: (0, 0)),
        ],
        out_specs=pl.BlockSpec((b_blk, out_pad), lambda i, j: (i, 0)),
        scratch_shapes=[pltpu.VMEM((b_blk, F_), jnp.float32)],
    )

    out_p = pl.pallas_call(
        kernel,
        out_shape=jax.ShapeDtypeStruct((B, out_pad), jnp.float32),
        grid_spec=grid_spec,
        compiler_params=pltpu.CompilerParams(
            # batch blocks are independent -> parallel (v7x 2-TC sharding);
            # HW axis carries the pooled-sum accumulator -> arbitrary.
            dimension_semantics=("parallel", "arbitrary")),
    )(x_aug.astype(compute_dtype), w_full.astype(compute_dtype), fcw_p, fcb_p)

    return out_p[:, :OUT]


# ---------------------------------------------------------------------------
# Pure-JAX reference (mirrors the PyTorch forward pass)
# ---------------------------------------------------------------------------
def encoder_reference(x_nchw, params):
    B, C, H, W = x_nchw.shape
    lin_h = jnp.linspace(-1.0, 1.0, H)[:, None] * jnp.ones((1, W))
    lin_w = jnp.linspace(-1.0, 1.0, W)[None, :] * jnp.ones((H, 1))
    coords = jnp.broadcast_to(jnp.stack([lin_h, lin_w], 0)[None], (B, 2, H, W))
    xc = jnp.concatenate([x_nchw, coords], axis=1)                  # (B, C+2, H, W)
    w_full = jnp.concatenate([params["wx"], params["wc"]], 0)       # (C+2, F)
    feat = jnp.einsum("bchw,cf->bfhw", xc, w_full)
    feat = feat + params["cb"][0][None, :, None, None]
    feat = jnp.maximum(feat, 0.0)
    pooled = jnp.mean(feat, axis=(2, 3))                            # (B, F)
    return pooled @ params["fcw"] + params["fcb"][0]


def init_params(key, c_in, feat_dim, out_dim):
    k1, k2, k3, k4 = jax.random.split(key, 4)
    scale_conv = 1.0 / np.sqrt(c_in + 2)
    scale_fc = 1.0 / np.sqrt(feat_dim)
    return {
        "wx": jax.random.normal(k1, (c_in, feat_dim), jnp.float32) * scale_conv,
        "wc": jax.random.normal(k2, (2, feat_dim), jnp.float32) * scale_conv,
        "cb": jax.random.normal(k3, (1, feat_dim), jnp.float32) * 0.01,
        "fcw": jax.random.normal(k4, (feat_dim, out_dim), jnp.float32) * scale_fc,
        "fcb": jnp.zeros((1, out_dim), jnp.float32),
    }


if __name__ == "__main__":
    B, C, H, W = 2, 4, 16, 16
    FEAT, OUT = 512, 32

    key = jax.random.PRNGKey(0)
    kx, kp = jax.random.split(key)
    x = jax.random.normal(kx, (B, C, H, W), jnp.float32)
    params = init_params(kp, C, FEAT, OUT)

    # f32 here so the tight tolerance check holds; pass
    # compute_dtype=jnp.bfloat16 on v6e/v7x for the halved-bytes / 2x-MXU path.
    out = encoder_forward(x, params, compute_dtype=jnp.float32)
    out = jax.block_until_ready(out)

    ref = encoder_reference(x, params)
    assert out.shape == (B, OUT), out.shape
    np.testing.assert_allclose(np.asarray(out), np.asarray(ref),
                               rtol=1e-4, atol=1e-4)
    print("KERNEL_OK")
</pallas_src>

<mosaic_0001>
module attributes {stable_mosaic.version = 11 : i64} {
  func.func @_encoder_kernel(%arg0: i32, %arg1: i32, %arg2: memref<2x64x8xf32, #tpu.memory_space<vmem>>, %arg3: memref<8x512xf32, #tpu.memory_space<vmem>>, %arg4: memref<512x128xf32, #tpu.memory_space<vmem>>, %arg5: memref<1x128xf32, #tpu.memory_space<vmem>>, %arg6: memref<2x128xf32, #tpu.memory_space<vmem>>, %arg7: memref<2x512xf32, #tpu.memory_space<vmem>>) attributes {dimension_semantics = [#tpu.dimension_semantics<parallel>, #tpu.dimension_semantics<arbitrary>], iteration_bounds = array<i64: 1, 4>, scalar_prefetch = 0 : i64, scratch_operands = 1 : i64, tpu.core_type = #tpu.core_type<tc>, window_params = [{transform_indices = @transform_0, window_bounds = array<i64: 2, 64, 8>}, {pipeline_mode = #tpu.pipeline_mode<synchronous>, transform_indices = @transform_1, window_bounds = array<i64: 8, 512>}, {pipeline_mode = #tpu.pipeline_mode<synchronous>, transform_indices = @transform_2, window_bounds = array<i64: 512, 128>}, {pipeline_mode = #tpu.pipeline_mode<synchronous>, transform_indices = @transform_3, window_bounds = array<i64: 1, 128>}, {transform_indices = @transform_4, window_bounds = array<i64: 2, 128>}]} {
    %c0_i32 = arith.constant 0 : i32
    %0 = arith.cmpi eq, %arg1, %c0_i32 : i32
    %1 = arith.extui %0 : i1 to i32
    %c0_i32_0 = arith.constant 0 : i32
    %2 = arith.cmpi ne, %1, %c0_i32_0 : i32
    scf.if %2 {
      %cst_12 = arith.constant 0.000000e+00 : f32
      %17 = vector.broadcast %cst_12 : f32 to vector<2x512xf32>
      %c0_13 = arith.constant 0 : index
      %c0_14 = arith.constant 0 : index
      %18 = vector.load %arg7[%c0_13, %c0_14] : memref<2x512xf32, #tpu.memory_space<vmem>>, vector<2x512xf32>
      tpu.vector_store %arg7[%c0_13, %c0_14], %17 {strides = array<i32>} : memref<2x512xf32, #tpu.memory_space<vmem>>, vector<2x512xf32>,
    } else {
    }
    %c0 = arith.constant 0 : index
    %c0_1 = arith.constant 0 : index
    %c0_2 = arith.constant 0 : index
    %3 = vector.load %arg2[%c0, %c0_1, %c0_2] : memref<2x64x8xf32, #tpu.memory_space<vmem>>, vector<2x64x8xf32>
    %4 = vector.shape_cast %3 : vector<2x64x8xf32> to vector<128x8xf32>
    %c0_3 = arith.constant 0 : index
    %c0_4 = arith.constant 0 : index
    %5 = vector.load %arg3[%c0_3, %c0_4] : memref<8x512xf32, #tpu.memory_space<vmem>>, vector<8x512xf32>
    %cst = arith.constant dense<0.000000e+00> : vector<128x512xf32>
    %6 = tpu.matmul %4, %5, %cst {dimension_numbers = #tpu.dot_dimension_numbers<[1], [0], [0], [1], [0, 0, 1, 1], [], []>} : vector<128x8xf32>, vector<8x512xf32>, vector<128x512xf32> -> vector<128x512xf32>
    %cst_5 = arith.constant 0.000000e+00 : f32
    %7 = vector.broadcast %cst_5 : f32 to vector<128x512xf32>
    %8 = arith.maximumf %6, %7 : vector<128x512xf32>
    %c0_6 = arith.constant 0 : index
    %c0_7 = arith.constant 0 : index
    %9 = vector.load %arg7[%c0_6, %c0_7] : memref<2x512xf32, #tpu.memory_space<vmem>>, vector<2x512xf32>
    %10 = vector.shape_cast %8 : vector<128x512xf32> to vector<2x64x512xf32>
    %cst_8 = arith.constant dense<0.000000e+00> : vector<2x512xf32>
    %11 = vector.multi_reduction <add>, %10, %cst_8 [1] : vector<2x64x512xf32> to vector<2x512xf32>
    %12 = arith.addf %9, %11 : vector<2x512xf32>
    %c0_9 = arith.constant 0 : index
    %c0_10 = arith.constant 0 : index
    %13 = vector.load %arg7[%c0_9, %c0_10] : memref<2x512xf32, #tpu.memory_space<vmem>>, vector<2x512xf32>
    tpu.vector_store %arg7[%c0_9, %c0_10], %12 {strides = array<i32>} : memref<2x512xf32, #tpu.memory_space<vmem>>, vector<2x512xf32>,
    %c3_i32 = arith.constant 3 : i32
    %14 = arith.cmpi eq, %arg1, %c3_i32 : i32
    %15 = arith.extui %14 : i1 to i32
    %c0_i32_11 = arith.constant 0 : i32
    %16 = arith.cmpi ne, %15, %c0_i32_11 : i32
    scf.if %16 {
      %c0_12 = arith.constant 0 : index
      %c0_13 = arith.constant 0 : index
      %17 = vector.load %arg7[%c0_12, %c0_13] : memref<2x512xf32, #tpu.memory_space<vmem>>, vector<2x512xf32>
      %cst_14 = arith.constant 3.906250e-03 : f32
      %18 = vector.broadcast %cst_14 : f32 to vector<2x512xf32>
      %19 = arith.mulf %17, %18 : vector<2x512xf32>
      %c0_15 = arith.constant 0 : index
      %c0_16 = arith.constant 0 : index
      %20 = vector.load %arg4[%c0_15, %c0_16] : memref<512x128xf32, #tpu.memory_space<vmem>>, vector<512x128xf32>
      %cst_17 = arith.constant dense<0.000000e+00> : vector<2x128xf32>
      %21 = tpu.matmul %19, %20, %cst_17 {dimension_numbers = #tpu.dot_dimension_numbers<[1], [0], [0], [1], [0, 0, 1, 1], [], []>} : vector<2x512xf32>, vector<512x128xf32>, vector<2x128xf32> -> vector<2x128xf32>
      %c0_18 = arith.constant 0 : index
      %c0_19 = arith.constant 0 : index
      %22 = vector.load %arg5[%c0_18, %c0_19] : memref<1x128xf32, #tpu.memory_space<vmem>>, vector<1x128xf32>
      %23 = vector.broadcast %22 : vector<1x128xf32> to vector<2x128xf32>
      %24 = arith.addf %21, %23 : vector<2x128xf32>
      %c0_20 = arith.constant 0 : index
      %c0_21 = arith.constant 0 : index
      %25 = vector.load %arg6[%c0_20, %c0_21] : memref<2x128xf32, #tpu.memory_space<vmem>>, vector<2x128xf32>
      tpu.vector_store %arg6[%c0_20, %c0_21], %24 {strides = array<i32>} : memref<2x128xf32, #tpu.memory_space<vmem>>, vector<2x128xf32>,
    } else {
    }
    return
  }
  func.func @transform_0(%arg0: i32, %arg1: i32) -> (i32, i32, i32) {
    %c0_i32 = arith.constant 0 : i32
    %c0_i32_0 = arith.constant 0 : i32
    return %arg0, %arg1, %c0_i32 : i32, i32, i32
  }
  func.func @transform_1(%arg0: i32, %arg1: i32) -> (i32, i32) {
    %c0_i32 = arith.constant 0 : i32
    %c0_i32_0 = arith.constant 0 : i32
    %c0_i32_1 = arith.constant 0 : i32
    return %c0_i32, %c0_i32_0 : i32, i32
  }
  func.func @transform_2(%arg0: i32, %arg1: i32) -> (i32, i32) {
    %c0_i32 = arith.constant 0 : i32
    %c0_i32_0 = arith.constant 0 : i32
    %c0_i32_1 = arith.constant 0 : i32
    return %c0_i32, %c0_i32_0 : i32, i32
  }
  func.func @transform_3(%arg0: i32, %arg1: i32) -> (i32, i32) {
    %c0_i32 = arith.constant 0 : i32
    %c0_i32_0 = arith.constant 0 : i32
    %c0_i32_1 = arith.constant 0 : i32
    return %c0_i32, %c0_i32_0 : i32, i32
  }
  func.func @transform_4(%arg0: i32, %arg1: i32) -> (i32, i32) {
    %c0_i32 = arith.constant 0 : i32
    %c0_i32_0 = arith.constant 0 : i32
    return %arg0, %c0_i32 : i32, i32
  }
}

</mosaic_0001>

<bundles_post_ra>
// kernel: tpu_custom_call.1
= control target key start
LH: loop header
LB: loop body
LE: loop exit
PB: predicated region body
PF: predicated region fallthrough
CT: control target
= control target key end

     0   :  { %9 = vsyncpa [#allocation5], 0  ;;  %s1565_s15 = smov 0   ;;  %s1567_s16 = smov 0   ;;  %s1981_s0 = inlined_call_operand.vmem [shape: f32[2,256,8], index: 0, kind: input, shape index: {}]   ;;  %s1982_s1 = inlined_call_operand.vmem [shape: f32[8,512], index: 1, kind: input, shape index: {}]   ;;  %s1983_s2 = inlined_call_operand.vmem [shape: f32[512,128], index: 2, kind: input, shape index: {}]   ;;  %s1984_s3 = inlined_call_operand.vmem [shape: f32[1,128], index: 3, kind: input, shape index: {}]   ;;  %s1985_s4 = inlined_call_operand.hbm [shape: f32[2,128], index: 4, kind: output, shape index: {}]  }
   0x1   :  { %s1569_s17 = smov 0   ;;  %s1571_s18 = smov 0  }
   0x2   :  { %s1573_s19 = smov 0  }
   0x3 LB: > { %s1234_s20 = sadd.s32 4294967295, %s1534_s19   ;;  %s24_s21 = sadd.s32 1, %s1530_s18  ;;  %s1534_s19 = sphi %s1573_s19, %s15_s19   ;;  %s1530_s18 = sphi %s1571_s18, %s1990_s18   ;;  %s1526_s17 = sphi %s1569_s17, %s1989_s17   ;;  %s1522_s16 = sphi %s1567_s16, %s1988_s16   ;;  %s1518_s15 = sphi %s1565_s15, %s1987_s15  }
   0x4   : > { %p25_p0 = scmp.ge.s32.totalorder %s24_s21, 4  ;;  %p43_p1 = scmp.ne.s32.totalorder %s1522_s16, %s1518_s15 }
   0x5   : > { %p44_p2 = scmp.eq.s32.totalorder %s1534_s19, 0  ;;  %s36_s23 = sadd.s32 1, %s1522_s16 }
   0x6   : > { %s1992_s21 = smov (%p25_p0, %s24_s21), 0  ;;  %p1236_p5 = scmp.ge.s32.totalorder %s1534_s19, 4 }
   0x7   : > { %p45_p3 = por %p44_p2, %p43_p1  ;;  %s32_s22 = ssub.s32 %s1530_s18, %s1992_s21 }
   0x8   : > { %p34_p4 = scmp.eq.s32.totalorder %s32_s22, 0  ;;  %167 = sbr.rel (%p1236_p5) target bundleno = 27 (0x1b), region = 28 }
   0xa   : > { %s1601_s24 = scalar_select %p34_p4, %s1522_s16, %s36_s23  }
   0xf   : > { %170 = sbr.rel (!%p45_p3) target bundleno = 27 (0x1b), region = 32  ;;  %s172_s25 = sand.u32 (%p45_p3), 1, %s1522_s16  }
  0x10   : > { %s1281_s26 = sshll.u32 (%p45_p3), %s1530_s18, 6  ;;  %s1237_s27 = sshll.u32 (%p45_p3), %s172_s25, 7 }
  0x11   : > { %s1609_s30 = scalar_lea.vmem (%p45_p3), %s1981_s0, %s1281_s26  ;;  %s174_s5 = scalar_lea.vmem (%p45_p3), [#allocation3], %s1237_s27 }
  0x12   : > { %v238_v0 = vld [vmem:[%s1609_s30] sm:$0xff] (%p45_p3)  ;;  %v240_v1 = vld [vmem:[%s1609_s30 + $0x8] sm:$0xff] (%p45_p3)  ;;  %v242_v2 = vld [vmem:[%s1609_s30 + $0x10] sm:$0xff] (%p45_p3) }
  0x13   : > { %239 = vst [vmem:[%s174_s5] sm:$0xff] (%p45_p3), %v238_v0  ;;  %241 = vst [vmem:[%s174_s5 + $0x8] sm:$0xff] (%p45_p3), %v240_v1  ;;  %v244_v3 = vld [vmem:[%s1609_s30 + $0x18] sm:$0xff] (%p45_p3)  ;;  %v246_v4 = vld [vmem:[%s1609_s30 + $0x20] sm:$0xff] (%p45_p3) }
  0x14   : > { %243 = vst [vmem:[%s174_s5 + $0x10] sm:$0xff] (%p45_p3), %v242_v2  ;;  %v248_v5 = vld [vmem:[%s1609_s30 + $0x28] sm:$0xff] (%p45_p3)  ;;  %245 = vst [vmem:[%s174_s5 + $0x18] sm:$0xff] (%p45_p3), %v244_v3  ;;  %v250_v6 = vld [vmem:[%s1609_s30 + $0x30] sm:$0xff] (%p45_p3) }
  0x15   : > { %247 = vst [vmem:[%s174_s5 + $0x20] sm:$0xff] (%p45_p3), %v246_v4  ;;  %249 = vst [vmem:[%s174_s5 + $0x28] sm:$0xff] (%p45_p3), %v248_v5  ;;  %v252_v7 = vld [vmem:[%s1609_s30 + $0x38] sm:$0xff] (%p45_p3)  ;;  %v254_v8 = vld [vmem:[%s1609_s30 + $0x100] sm:$0xff] (%p45_p3) }
  0x16   : > { %251 = vst [vmem:[%s174_s5 + $0x30] sm:$0xff] %v250_v6  ;;  %253 = vst [vmem:[%s174_s5 + $0x38] sm:$0xff] %v252_v7  ;;  %v256_v9 = vld [vmem:[%s1609_s30 + $0x108] sm:$0xff]  ;;  %v258_v10 = vld [vmem:[%s1609_s30 + $0x110] sm:$0xff] }
  0x17   : > { %255 = vst [vmem:[%s174_s5 + $0x40] sm:$0xff] %v254_v8  ;;  %v260_v11 = vld [vmem:[%s1609_s30 + $0x118] sm:$0xff]  ;;  %257 = vst [vmem:[%s174_s5 + $0x48] sm:$0xff] %v256_v9  ;;  %v262_v12 = vld [vmem:[%s1609_s30 + $0x120] sm:$0xff] }
  0x18   : > { %259 = vst [vmem:[%s174_s5 + $0x50] sm:$0xff] %v258_v10  ;;  %261 = vst [vmem:[%s174_s5 + $0x58] sm:$0xff] %v260_v11  ;;  %v264_v13 = vld [vmem:[%s1609_s30 + $0x128] sm:$0xff]  ;;  %v266_v14 = vld [vmem:[%s1609_s30 + $0x130] sm:$0xff] }
  0x19   : > { %263 = vst [vmem:[%s174_s5 + $0x60] sm:$0xff] %v262_v12  ;;  %265 = vst [vmem:[%s174_s5 + $0x68] sm:$0xff] %v264_v13  ;;  %v268_v15 = vld [vmem:[%s1609_s30 + $0x138] sm:$0xff] }
  0x1a   : > { %267 = vst [vmem:[%s174_s5 + $0x70] sm:$0xff] %v266_v14  ;;  %269 = vst [vmem:[%s174_s5 + $0x78] sm:$0xff] %v268_v15 }
  0x1b PF: > { %p1240_p6 = scmp.ge.s32.totalorder %s1534_s19, 1  ;;  %p274_p7 = scmp.lt.s32.totalorder %s1534_s19, 5 }
  0x1d   : > { %p275_p8 = pnand %p1240_p6, %p274_p7 }
  0x1e   : > { %s281_s6 = sand.u32 (!%p275_p8), 1, %s1518_s15   ;;  %p1242_p9 = scmp.ne.s32.totalorder (!%p275_p8), %s1526_s17, 0 }
  0x1f   : > { %278 = sbr.rel (%p275_p8) target bundleno = 625 (0x271), region = 70  ;;  %s1241_s7 = sshll.u32 (!%p275_p8), %s281_s6, 7 }
  0x20   : > { %s1630_s8 = scalar_lea.vmem (!%p275_p8), [#allocation3], %s1241_s7 }
  0x26   : > { %306 = sbr.rel (%p1242_p9) target bundleno = 45 (0x2d), region = 78  ;;  %v1536_v16 = vmov (!%p1242_p9), 0.0  }
  0x27   : > { %307 = vst [vmem:[#allocation2] sm:$0xff] (!%p1242_p9), %v1536_v16 }
  0x2d PF: > { %v325_v17 = vld [vmem:[%s1982_s1 + $0x8] sm:$0xff]  ;;  %v327_v18 = vld [vmem:[%s1982_s1 + $0x18] sm:$0xff]  ;;  %v324_v19 = vld [vmem:[%s1982_s1] sm:$0xff]  ;;  %vm328_vm0 = vcmask 64512   ;;  %v1537_v22 = vmov 0.0   ;;  %vm915_vm1 = vcmask 1041409  }
  0x2e   : > { %377 = vmatprep.subr.mxu0 %v325_v17  ;;  %538 = vmatprep.subr.mxu1 %v327_v18  ;;  %v326_v20 = vld [vmem:[%s1982_s1 + $0x10] sm:$0xff]  ;;  %v308_v21 = vld [vmem:[%s1630_s8] sm:$0xff]  ;;  %v310_v24 = vld [vmem:[%s1630_s8 + $0x10] sm:$0xff]  ;;  %vm917_vm2 = vcmask 1043459   ;;  %vm919_vm3 = vcmask 1045509   ;;  %vm921_vm4 = vcmask 1047559  }
  0x2f   : > { %378 = vmatpush1.msra.mxu0 %v324_v19  ;;  %441 = vmatprep.mubr.f32.mxu0 %v1537_v22  ;;  %v309_v23 = vld [vmem:[%s1630_s8 + $0x8] sm:$0xff]  ;;  %v311_v25 = vld [vmem:[%s1630_s8 + $0x18] sm:$0xff]  ;;  %v312_v26 = vld [vmem:[%s1630_s8 + $0x20] sm:$0xff]  ;;  %p1275_p10 = scmp.ne.s32.totalorder %s1526_s17, 3 }
  0x30   : > { %539 = vmatpush1.msra.mxu1 %v326_v20  ;;  %602 = vmatprep.mubr.f32.mxu1 %v1537_v22  ;;  %v313_v27 = vld [vmem:[%s1630_s8 + $0x28] sm:$0xff]  ;;  %v314_v28 = vld [vmem:[%s1630_s8 + $0x30] sm:$0xff]  ;;  %v315_v29 = vld [vmem:[%s1630_s8 + $0x38] sm:$0xff] }
  0x31   : > { %1243 = vmatmul.mubr.msk.f32.vlgmr.msra.gmra.mrb[0].mxu0 %vm328_vm0, %v308_v21  ;;  %1259 = vmatmul.mubr.msk.f32.vlgmr.msra.gmra.mrb[0].mxu1 %vm328_vm0, %v308_v21  ;;  %v316_v30 = vld [vmem:[%s1630_s8 + $0x40] sm:$0xff]  ;;  %v317_v31 = vld [vmem:[%s1630_s8 + $0x48] sm:$0xff]  ;;  %v318_v32 = vld [vmem:[%s1630_s8 + $0x50] sm:$0xff] }
  0x32   : > { %447 = vmatprep.mubr.f32.mxu0 %v1537_v22  ;;  %608 = vmatprep.mubr.f32.mxu1 %v1537_v22  ;;  %v319_v33 = vld [vmem:[%s1630_s8 + $0x58] sm:$0xff]  ;;  %v320_v34 = vld [vmem:[%s1630_s8 + $0x60] sm:$0xff]  ;;  %v321_v35 = vld [vmem:[%s1630_s8 + $0x68] sm:$0xff] }
  0x33   : > { %v322_v36 = vld [vmem:[%s1630_s8 + $0x70] sm:$0xff]  ;;  %v323_v37 = vld [vmem:[%s1630_s8 + $0x78] sm:$0xff] }
  0x35   : > { %1244 = vmatmul.mubr.msk.f32.gmra.mrb[2].mxu0 %vm328_vm0, %v309_v23  ;;  %1260 = vmatmul.mubr.msk.f32.gmra.mrb[2].mxu1 %vm328_vm0, %v309_v23 }
  0x36   : > { %453 = vmatprep.mubr.f32.mxu0 %v1537_v22  ;;  %614 = vmatprep.mubr.f32.mxu1 %v1537_v22 }
  0x39   : > { %1245 = vmatmul.mubr.msk.f32.gmra.mrb[4].mxu0 %vm328_vm0, %v310_v24  ;;  %1261 = vmatmul.mubr.msk.f32.gmra.mrb[4].mxu1 %vm328_vm0, %v310_v24 }
  0x3a   : > { %459 = vmatprep.mubr.f32.mxu0 %v1537_v22  ;;  %620 = vmatprep.mubr.f32.mxu1 %v1537_v22 }
  0x3d   : > { %1246 = vmatmul.mubr.msk.f32.gmra.mrb[6].mxu0 %vm328_vm0, %v311_v25  ;;  %1262 = vmatmul.mubr.msk.f32.gmra.mrb[6].mxu1 %vm328_vm0, %v311_v25 }
  0x3e   : > { %465 = vmatprep.mubr.f32.mxu0 %v1537_v22  ;;  %626 = vmatprep.mubr.f32.mxu1 %v1537_v22 }
  0x41   : > { %1247 = vmatmul.mubr.msk.f32.gmra.mrb[8].mxu0 %vm328_vm0, %v312_v26  ;;  %1263 = vmatmul.mubr.msk.f32.gmra.mrb[8].mxu1 %vm328_vm0, %v312_v26 }
  0x42   : > { %471 = vmatprep.mubr.f32.mxu0 %v1537_v22  ;;  %632 = vmatprep.mubr.f32.mxu1 %v1537_v22 }
  0x45   : > { %1248 = vmatmul.mubr.msk.f32.gmra.mrb[10].mxu0 %vm328_vm0, %v313_v27  ;;  %1264 = vmatmul.mubr.msk.f32.gmra.mrb[10].mxu1 %vm328_vm0, %v313_v27 }
  0x46   : > { %477 = vmatprep.mubr.f32.mxu0 %v1537_v22  ;;  %638 = vmatprep.mubr.f32.mxu1 %v1537_v22 }
  0x49   : > { %1249 = vmatmul.mubr.msk.f32.gmra.mrb[12].mxu0 %vm328_vm0, %v314_v28  ;;  %1265 = vmatmul.mubr.msk.f32.gmra.mrb[12].mxu1 %vm328_vm0, %v314_v28 }
  0x4a   : > { %483 = vmatprep.mubr.f32.mxu0 %v1537_v22  ;;  %644 = vmatprep.mubr.f32.mxu1 %v1537_v22 }
  0x4d   : > { %1250 = vmatmul.mubr.msk.f32.gmra.mrb[14].mxu0 %vm328_vm0, %v315_v29  ;;  %1266 = vmatmul.mubr.msk.f32.gmra.mrb[14].mxu1 %vm328_vm0, %v315_v29 }
  0x4e   : > { %489 = vmatprep.mubr.f32.mxu0 %v1537_v22  ;;  %650 = vmatprep.mubr.f32.mxu1 %v1537_v22 }
  0x51   : > { %1251 = vmatmul.mubr.msk.f32.gmra.mrb[16].mxu0 %vm328_vm0, %v316_v30  ;;  %1267 = vmatmul.mubr.msk.f32.gmra.mrb[16].mxu1 %vm328_vm0, %v316_v30 }
  0x52   : > { %495 = vmatprep.mubr.f32.mxu0 %v1537_v22  ;;  %656 = vmatprep.mubr.f32.mxu1 %v1537_v22 }
  0x55   : > { %1252 = vmatmul.mubr.msk.f32.gmra.mrb[18].mxu0 %vm328_vm0, %v317_v31  ;;  %1268 = vmatmul.mubr.msk.f32.gmra.mrb[18].mxu1 %vm328_vm0, %v317_v31 }
  0x56   : > { %501 = vmatprep.mubr.f32.mxu0 %v1537_v22  ;;  %662 = vmatprep.mubr.f32.mxu1 %v1537_v22 }
  0x59   : > { %1253 = vmatmul.mubr.msk.f32.gmra.mrb[20].mxu0 %vm328_vm0, %v318_v32  ;;  %1269 = vmatmul.mubr.msk.f32.gmra.mrb[20].mxu1 %vm328_vm0, %v318_v32 }
  0x5a   : > { %507 = vmatprep.mubr.f32.mxu0 %v1537_v22  ;;  %668 = vmatprep.mubr.f32.mxu1 %v1537_v22 }
  0x5d   : > { %1254 = vmatmul.mubr.msk.f32.gmra.mrb[22].mxu0 %vm328_vm0, %v319_v33  ;;  %1270 = vmatmul.mubr.msk.f32.gmra.mrb[22].mxu1 %vm328_vm0, %v319_v33 }
  0x5e   : > { %513 = vmatprep.mubr.f32.mxu0 %v1537_v22  ;;  %674 = vmatprep.mubr.f32.mxu1 %v1537_v22 }
  0x61   : > { %1255 = vmatmul.mubr.msk.f32.gmra.mrb[24].mxu0 %vm328_vm0, %v320_v34  ;;  %1271 = vmatmul.mubr.msk.f32.gmra.mrb[24].mxu1 %vm328_vm0, %v320_v34 }
  0x62   : > { %519 = vmatprep.mubr.f32.mxu0 %v1537_v22  ;;  %680 = vmatprep.mubr.f32.mxu1 %v1537_v22 }
  0x65   : > { %1256 = vmatmul.mubr.msk.f32.gmra.mrb[26].mxu0 %vm328_vm0, %v321_v35  ;;  %1272 = vmatmul.mubr.msk.f32.gmra.mrb[26].mxu1 %vm328_vm0, %v321_v35 }
  0x66   : > { %525 = vmatprep.mubr.f32.mxu0 %v1537_v22  ;;  %686 = vmatprep.mubr.f32.mxu1 %v1537_v22 }
  0x69   : > { %1257 = vmatmul.mubr.msk.f32.gmra.mrb[28].mxu0 %vm328_vm0, %v322_v36  ;;  %1273 = vmatmul.mubr.msk.f32.gmra.mrb[28].mxu1 %vm328_vm0, %v322_v36 }
  0x6a   : > { %531 = vmatprep.mubr.f32.mxu0 %v1537_v22  ;;  %692 = vmatprep.mubr.f32.mxu1 %v1537_v22 }
  0x6d   : > { %1258 = vmatmul.mubr.msk.f32.gmra.mrb[30].mxu0 %vm328_vm0, %v323_v37  ;;  %1274 = vmatmul.mubr.msk.f32.gmra.mrb[30].mxu1 %vm328_vm0, %v323_v37 }
 0x104   : > { %v443_v38 = vpop.f32.mrb[0].mxu0  ;;  %v604_v39 = vpop.f32.mrb[0].mxu1 }
 0x105   : > { %v445_v40 = vpop.f32.mrb[1].mxu0  ;;  %v606_v41 = vpop.f32.mrb[1].mxu1  ;;  %v699_v44 = vmax.f32 %v443_v38, 0.0  ;;  %v701_v45 = vmax.f32 %v604_v39, 0.0 }
 0x106   : > { %v700_v50 = vmax.f32 %v445_v40, 0.0  ;;  %v702_v51 = vmax.f32 %v606_v41, 0.0 }
 0x108   : > { %v449_v42 = vpop.f32.mrb[2].mxu0  ;;  %v610_v43 = vpop.f32.mrb[2].mxu1 }
 0x109   : > { %v703_v46 = vmax.f32 %v449_v42, 0.0  ;;  %v705_v47 = vmax.f32 %v610_v43, 0.0  ;;  %v451_v48 = vpop.f32.mrb[3].mxu0  ;;  %v612_v49 = vpop.f32.mrb[3].mxu1 }
 0x10a   : > { %v704_v52 = vmax.f32 %v451_v48, 0.0  ;;  %v706_v53 = vmax.f32 %v612_v49, 0.0 }
 0x10b   : > { %v764_v54 = vadd.f32 %v703_v46, %v699_v44  ;;  %v790_v55 = vadd.f32 %v705_v47, %v701_v45 }
 0x10c   : > { %v777_v56 = vadd.f32 %v704_v52, %v700_v50  ;;  %v803_v57 = vadd.f32 %v706_v53, %v702_v51  ;;  %v455_v58 = vpop.f32.mrb[4].mxu0  ;;  %v616_v59 = vpop.f32.mrb[4].mxu1  ;;  %v1538_v50 = vmov 1983009808   ;;  %v881_v52 = vlaneseq }
 0x10d   : > { %v707_v60 = vmax.f32 %v455_v58, 0.0  ;;  %v709_v61 = vmax.f32 %v616_v59, 0.0  ;;  %v457_v62 = vpop.f32.mrb[5].mxu0  ;;  %v618_v63 = vpop.f32.mrb[5].mxu1  ;;  %v879_v51 = vunpack.c.l.s4 %v1538_v50 }
 0x10e   : > { %v708_v0 = vmax.f32 %v457_v62, 0.0  ;;  %v710_v1 = vmax.f32 %v618_v63, 0.0 }
 0x10f   : > { %v765_v2 = vadd.f32 %v764_v54, %v707_v60  ;;  %v791_v3 = vadd.f32 %v790_v55, %v709_v61 }
 0x110   : > { %v778_v4 = vadd.f32 %v777_v56, %v708_v0  ;;  %v804_v5 = vadd.f32 %v803_v57, %v710_v1  ;;  %v461_v6 = vpop.f32.mrb[6].mxu0  ;;  %v622_v7 = vpop.f32.mrb[6].mxu1  ;;  %v880_v0 = vunpack.c.0.s8 %v879_v51  ;;  %v882_v1 = vshrl.u32 %v881_v52, 7 }
 0x111   : > { %v711_v8 = vmax.f32 %v461_v6, 0.0  ;;  %v713_v9 = vmax.f32 %v622_v7, 0.0  ;;  %v463_v10 = vpop.f32.mrb[7].mxu0  ;;  %v624_v11 = vpop.f32.mrb[7].mxu1 }
 0x112   : > { %v712_v12 = vmax.f32 %v463_v10, 0.0  ;;  %v714_v13 = vmax.f32 %v624_v11, 0.0 }
 0x113   : > { %v766_v14 = vadd.f32 %v765_v2, %v711_v8  ;;  %v792_v15 = vadd.f32 %v791_v3, %v713_v9 }
 0x114   : > { %v779_v16 = vadd.f32 %v778_v4, %v712_v12  ;;  %v805_v17 = vadd.f32 %v804_v5, %v714_v13  ;;  %v467_v18 = vpop.f32.mrb[8].mxu0  ;;  %v628_v19 = vpop.f32.mrb[8].mxu1 }
 0x115   : > { %v715_v20 = vmax.f32 %v467_v18, 0.0  ;;  %v717_v21 = vmax.f32 %v628_v19, 0.0  ;;  %v469_v22 = vpop.f32.mrb[9].mxu0  ;;  %v630_v23 = vpop.f32.mrb[9].mxu1 }
 0x116   : > { %v716_v24 = vmax.f32 %v469_v22, 0.0  ;;  %v718_v25 = vmax.f32 %v630_v23, 0.0 }
 0x117   : > { %v767_v26 = vadd.f32 %v766_v14, %v715_v20  ;;  %v793_v27 = vadd.f32 %v792_v15, %v717_v21  ;;  %v1725_v14 = vsub.s32 %v880_v0, %v882_v1 }
 0x118   : > { %v780_v28 = vadd.f32 %v779_v16, %v716_v24  ;;  %v806_v29 = vadd.f32 %v805_v17, %v718_v25  ;;  %v473_v30 = vpop.f32.mrb[10].mxu0  ;;  %v634_v31 = vpop.f32.mrb[10].mxu1 }
 0x119   : > { %v719_v32 = vmax.f32 %v473_v30, 0.0  ;;  %v721_v33 = vmax.f32 %v634_v31, 0.0  ;;  %v475_v34 = vpop.f32.mrb[11].mxu0  ;;  %v636_v35 = vpop.f32.mrb[11].mxu1 }
 0x11a   : > { %v720_v36 = vmax.f32 %v475_v34, 0.0  ;;  %v722_v37 = vmax.f32 %v636_v35, 0.0 }
 0x11b   : > { %v768_v38 = vadd.f32 %v767_v26, %v719_v32  ;;  %v794_v39 = vadd.f32 %v793_v27, %v721_v33 }
 0x11c   : > { %v781_v40 = vadd.f32 %v780_v28, %v720_v36  ;;  %v807_v41 = vadd.f32 %v806_v29, %v722_v37  ;;  %v479_v42 = vpop.f32.mrb[12].mxu0  ;;  %v640_v43 = vpop.f32.mrb[12].mxu1 }
 0x11d   : > { %v723_v44 = vmax.f32 %v479_v42, 0.0  ;;  %v725_v45 = vmax.f32 %v640_v43, 0.0  ;;  %v481_v46 = vpop.f32.mrb[13].mxu0  ;;  %v642_v47 = vpop.f32.mrb[13].mxu1 }
 0x11e   : > { %v724_v48 = vmax.f32 %v481_v46, 0.0  ;;  %v726_v49 = vmax.f32 %v642_v47, 0.0 }
 0x11f   : > { %v769_v53 = vadd.f32 %v768_v38, %v723_v44  ;;  %v795_v54 = vadd.f32 %v794_v39, %v725_v45 }
 0x120   : > { %v782_v55 = vadd.f32 %v781_v40, %v724_v48  ;;  %v808_v56 = vadd.f32 %v807_v41, %v726_v49  ;;  %v485_v57 = vpop.f32.mrb[14].mxu0  ;;  %v646_v58 = vpop.f32.mrb[14].mxu1 }
 0x121   : > { %v727_v59 = vmax.f32 %v485_v57, 0.0  ;;  %v729_v60 = vmax.f32 %v646_v58, 0.0  ;;  %v487_v61 = vpop.f32.mrb[15].mxu0  ;;  %v648_v62 = vpop.f32.mrb[15].mxu1 }
 0x122   : > { %v728_v63 = vmax.f32 %v487_v61, 0.0  ;;  %v730_v2 = vmax.f32 %v648_v62, 0.0 }
 0x123   : > { %v770_v3 = vadd.f32 %v769_v53, %v727_v59  ;;  %v796_v4 = vadd.f32 %v795_v54, %v729_v60 }
 0x124   : > { %v783_v5 = vadd.f32 %v782_v55, %v728_v63  ;;  %v809_v6 = vadd.f32 %v808_v56, %v730_v2  ;;  %v491_v7 = vpop.f32.mrb[16].mxu0  ;;  %v652_v8 = vpop.f32.mrb[16].mxu1 }
 0x125   : > { %v771_v9 = vrot.slane %v770_v3, 4  ;;  %v797_v10 = vrot.slane %v796_v4, 4  ;;  %v493_v11 = vpop.f32.mrb[17].mxu0  ;;  %v654_v12 = vpop.f32.mrb[17].mxu1  ;;  %v731_v18 = vmax.f32 %v491_v7, 0.0  ;;  %v733_v19 = vmax.f32 %v652_v8, 0.0 }
 0x126   : > { %v784_v13 = vrot.slane %v783_v5, 4  ;;  %v810_v15 = vrot.slane %v809_v6, 4  ;;  %v732_v22 = vmax.f32 %v493_v11, 0.0  ;;  %v734_v23 = vmax.f32 %v654_v12, 0.0 }
 0x127   : > { %v772_v16 = vadd.f32 %v771_v9, %v770_v3  ;;  %v798_v17 = vadd.f32 %v797_v10, %v796_v4 }
 0x128   : > { %v785_v20 = vadd.f32 %v784_v13, %v783_v5  ;;  %v811_v21 = vadd.f32 %v810_v15, %v809_v6  ;;  %v497_v24 = vpop.f32.mrb[18].mxu0  ;;  %v658_v25 = vpop.f32.mrb[18].mxu1 }
 0x129   : > { %v773_v26 = vrot.slane %v772_v16, 2  ;;  %v799_v27 = vrot.slane %v798_v17, 2  ;;  %v735_v28 = vmax.f32 %v497_v24, 0.0  ;;  %v737_v29 = vmax.f32 %v658_v25, 0.0  ;;  %v499_v30 = vpop.f32.mrb[19].mxu0  ;;  %v660_v31 = vpop.f32.mrb[19].mxu1 }
 0x12a   : > { %v786_v32 = vrot.slane %v785_v20, 2  ;;  %v812_v33 = vrot.slane %v811_v21, 2  ;;  %v736_v34 = vmax.f32 %v499_v30, 0.0  ;;  %v738_v35 = vmax.f32 %v660_v31, 0.0 }
 0x12b   : > { %v774_v36 = vadd.f32 %v773_v26, %v772_v16  ;;  %v800_v37 = vadd.f32 %v799_v27, %v798_v17  ;;  %v816_v38 = vadd.f32 %v735_v28, %v731_v18  ;;  %v842_v39 = vadd.f32 %v737_v29, %v733_v19 }
 0x12c   : > { %v787_v40 = vadd.f32 %v786_v32, %v785_v20  ;;  %v813_v41 = vadd.f32 %v812_v33, %v811_v21  ;;  %v829_v42 = vadd.f32 %v736_v34, %v732_v22  ;;  %v855_v43 = vadd.f32 %v738_v35, %v734_v23  ;;  %v503_v44 = vpop.f32.mrb[20].mxu0  ;;  %v664_v45 = vpop.f32.mrb[20].mxu1 }
 0x12d   : > { %v775_v46 = vrot.slane %v774_v36, 1  ;;  %v801_v47 = vrot.slane %v800_v37, 1  ;;  %v739_v48 = vmax.f32 %v503_v44, 0.0  ;;  %v741_v49 = vmax.f32 %v664_v45, 0.0  ;;  %v505_v50 = vpop.f32.mrb[21].mxu0  ;;  %v666_v51 = vpop.f32.mrb[21].mxu1 }
 0x12e   : > { %v788_v52 = vrot.slane %v787_v40, 1  ;;  %v814_v53 = vrot.slane %v813_v41, 1  ;;  %v740_v54 = vmax.f32 %v505_v50, 0.0  ;;  %v742_v55 = vmax.f32 %v666_v51, 0.0 }
 0x12f   : > { %v776_v56 = vadd.f32 %v775_v46, %v774_v36  ;;  %v802_v57 = vadd.f32 %v801_v47, %v800_v37  ;;  %v817_v58 = vadd.f32 %v816_v38, %v739_v48  ;;  %v843_v59 = vadd.f32 %v842_v39, %v741_v49 }
 0x130   : > { %v789_v60 = vadd.f32 %v788_v52, %v787_v40  ;;  %v815_v61 = vadd.f32 %v814_v53, %v813_v41  ;;  %v830_v62 = vadd.f32 %v829_v42, %v740_v54  ;;  %v856_v63 = vadd.f32 %v855_v43, %v742_v55  ;;  %v509_v0 = vpop.f32.mrb[22].mxu0  ;;  %v670_v1 = vpop.f32.mrb[22].mxu1 }
 0x131   : > { %v743_v2 = vmax.f32 %v509_v0, 0.0  ;;  %v745_v3 = vmax.f32 %v670_v1, 0.0  ;;  %v511_v4 = vpop.f32.mrb[23].mxu0  ;;  %v672_v5 = vpop.f32.mrb[23].mxu1 }
 0x132   : > { %v876_v6 = vcombine.low %v776_v56, %v789_v60  ;;  %v877_v7 = vcombine.low %v802_v57, %v815_v61  ;;  %v744_v8 = vmax.f32 %v511_v4, 0.0  ;;  %v746_v9 = vmax.f32 %v672_v5, 0.0 }
 0x133   : > { %v818_v10 = vadd.f32 %v817_v58, %v743_v2  ;;  %v844_v11 = vadd.f32 %v843_v59, %v745_v3 }
 0x134   : > { %v1728_v12 = vrot.slane %v876_v6, %v1725_v14  ;;  %v1731_v13 = vrot.slane %v877_v7, %v1725_v14  ;;  %v831_v15 = vadd.f32 %v830_v62, %v744_v8  ;;  %v857_v16 = vadd.f32 %v856_v63, %v746_v9  ;;  %v515_v17 = vpop.f32.mrb[24].mxu0  ;;  %v676_v18 = vpop.f32.mrb[24].mxu1 }
 0x135   : > { %v747_v19 = vmax.f32 %v515_v17, 0.0  ;;  %v749_v20 = vmax.f32 %v676_v18, 0.0  ;;  %v517_v21 = vpop.f32.mrb[25].mxu0  ;;  %v678_v22 = vpop.f32.mrb[25].mxu1 }
 0x136   : > { %v892_v23 = vcombine.low %v1728_v12, %v1731_v13  ;;  %v748_v24 = vmax.f32 %v517_v21, 0.0  ;;  %v750_v25 = vmax.f32 %v678_v22, 0.0  ;;  %v932_v12 = vld [vmem:[%s1983_s2] sm:$0xff] (!%p1275_p10) }
 0x137   : > { %v819_v26 = vadd.f32 %v818_v10, %v747_v19  ;;  %v845_v27 = vadd.f32 %v844_v11, %v749_v20 }
 0x138   : > { %v832_v28 = vadd.f32 %v831_v15, %v748_v24  ;;  %v858_v29 = vadd.f32 %v857_v16, %v750_v25  ;;  %v521_v30 = vpop.f32.mrb[26].mxu0  ;;  %v682_v31 = vpop.f32.mrb[26].mxu1 }
 0x139   : > { %v751_v32 = vmax.f32 %v521_v30, 0.0  ;;  %v753_v33 = vmax.f32 %v682_v31, 0.0  ;;  %v523_v34 = vpop.f32.mrb[27].mxu0  ;;  %v684_v35 = vpop.f32.mrb[27].mxu1 }
 0x13a   : > { %v752_v36 = vmax.f32 %v523_v34, 0.0  ;;  %v754_v37 = vmax.f32 %v684_v35, 0.0 }
 0x13b   : > { %v820_v38 = vadd.f32 %v819_v26, %v751_v32  ;;  %v846_v39 = vadd.f32 %v845_v27, %v753_v33 }
 0x13c   : > { %v833_v40 = vadd.f32 %v832_v28, %v752_v36  ;;  %v859_v41 = vadd.f32 %v858_v29, %v754_v37  ;;  %v527_v42 = vpop.f32.mrb[28].mxu0  ;;  %v688_v43 = vpop.f32.mrb[28].mxu1  ;;  %v763_v37 = vld [vmem:[#allocation2] sm:$0xff] }
 0x13d   : > { %v755_v44 = vmax.f32 %v527_v42, 0.0  ;;  %v757_v45 = vmax.f32 %v688_v43, 0.0  ;;  %v529_v46 = vpop.f32.mrb[29].mxu0  ;;  %v690_v47 = vpop.f32.mrb[29].mxu1  ;;  %v948_v42 = vld [vmem:[%s1983_s2 + $0x80] sm:$0xff] (!%p1275_p10)  ;;  %v949_v43 = vld [vmem:[%s1983_s2 + $0x88] sm:$0xff] (!%p1275_p10) }
 0x13e   : > { %v756_v48 = vmax.f32 %v529_v46, 0.0  ;;  %v758_v49 = vmax.f32 %v690_v47, 0.0  ;;  %v1352_v13 = vpack.c.bf16 (!%p1275_p10), %v949_v43, %v948_v42 }
 0x13f   : > { %v821_v50 = vadd.f32 %v820_v38, %v755_v44  ;;  %v847_v51 = vadd.f32 %v846_v39, %v757_v45  ;;  %v980_v44 = vld [vmem:[%s1983_s2 + $0x180] sm:$0xff] (!%p1275_p10)  ;;  %v981_v45 = vld [vmem:[%s1983_s2 + $0x188] sm:$0xff] (!%p1275_p10) }
 0x140   : > { %v834_v52 = vadd.f32 %v833_v40, %v756_v48  ;;  %v860_v53 = vadd.f32 %v859_v41, %v758_v49  ;;  %v533_v54 = vpop.f32.mrb[30].mxu0  ;;  %v694_v55 = vpop.f32.mrb[30].mxu1  ;;  %v1384_v47 = vpack.c.bf16 (!%p1275_p10), %v981_v45, %v980_v44  ;;  %v964_v48 = vld [vmem:[%s1983_s2 + $0x100] sm:$0xff] (!%p1275_p10)  ;;  %v965_v49 = vld [vmem:[%s1983_s2 + $0x108] sm:$0xff] (!%p1275_p10)  ;;  %1353 = vmatprep.subr.bf16.mxu0 (!%p1275_p10), %v1352_v13  ;;  %v943_v13 = vld [vmem:[%s1983_s2 + $0x58] sm:$0xff] (!%p1275_p10) }
 0x141   : > { %v759_v56 = vmax.f32 %v533_v54, 0.0  ;;  %v761_v57 = vmax.f32 %v694_v55, 0.0  ;;  %v535_v58 = vpop.f32.mrb[31].mxu0  ;;  %v696_v59 = vpop.f32.mrb[31].mxu1  ;;  %v935_v54 = vld [vmem:[%s1983_s2 + $0x18] sm:$0xff] (!%p1275_p10) }
 0x142   : > { %v760_v60 = vmax.f32 %v535_v58, 0.0  ;;  %v762_v61 = vmax.f32 %v696_v59, 0.0  ;;  %1385 = vmatprep.subr.bf16.mxu1 (!%p1275_p10), %v1384_v47  ;;  %v983_v58 = vld [vmem:[%s1983_s2 + $0x198] sm:$0xff] (!%p1275_p10)  ;;  %v966_v59 = vld [vmem:[%s1983_s2 + $0x110] sm:$0xff] (!%p1275_p10)  ;;  %v961_v47 = vld [vmem:[%s1983_s2 + $0xe8] sm:$0xff] (!%p1275_p10) }
 0x143   : > { %v822_v62 = vadd.f32 %v821_v50, %v759_v56  ;;  %v848_v63 = vadd.f32 %v847_v51, %v761_v57  ;;  %v950_v50 = vld [vmem:[%s1983_s2 + $0x90] sm:$0xff] (!%p1275_p10)  ;;  %v1386_v51 = vpack.c.bf16 (!%p1275_p10), %v965_v49, %v964_v48  ;;  %v975_v45 = vld [vmem:[%s1983_s2 + $0x158] sm:$0xff] (!%p1275_p10)  ;;  %v992_v48 = vld [vmem:[%s1983_s2 + $0x1e0] sm:$0xff] (!%p1275_p10) }
 0x144   : > { %v835_v0 = vadd.f32 %v834_v52, %v760_v60  ;;  %v861_v1 = vadd.f32 %v860_v53, %v762_v61  ;;  %v951_v52 = vld [vmem:[%s1983_s2 + $0x98] sm:$0xff] (!%p1275_p10)  ;;  %v934_v53 = vld [vmem:[%s1983_s2 + $0x10] sm:$0xff] (!%p1275_p10)  ;;  %v993_v49 = vld [vmem:[%s1983_s2 + $0x1e8] sm:$0xff] (!%p1275_p10) }
 0x145   : > { %v823_v2 = vrot.slane %v822_v62, 4  ;;  %v849_v3 = vrot.slane %v848_v63, 4  ;;  %v1356_v55 = vpack.c.bf16 (!%p1275_p10), %v951_v52, %v950_v50  ;;  %v1358_v56 = vpack.c.bf16 (!%p1275_p10), %v935_v54, %v934_v53  ;;  %v982_v57 = vld [vmem:[%s1983_s2 + $0x190] sm:$0xff] (!%p1275_p10)  ;;  %1387 = vmatpush3.bf16.msra.mxu1 (!%p1275_p10), %v1386_v51  ;;  %v967_v61 = vld [vmem:[%s1983_s2 + $0x118] sm:$0xff] (!%p1275_p10)  ;;  %v944_v51 = vld [vmem:[%s1983_s2 + $0x60] sm:$0xff] (!%p1275_p10) }
 0x146   : > { %v836_v4 = vrot.slane %v835_v0, 4  ;;  %v862_v5 = vrot.slane %v861_v1, 4  ;;  %v1388_v60 = vpack.c.bf16 (!%p1275_p10), %v983_v58, %v982_v57  ;;  %v945_v54 = vld [vmem:[%s1983_s2 + $0x68] sm:$0xff] (!%p1275_p10)  ;;  %v1408_v57 = vpack.c.bf16 (!%p1275_p10), %v993_v49, %v992_v48 }
 0x147   : > { %v824_v6 = vadd.f32 %v823_v2, %v822_v62  ;;  %v850_v7 = vadd.f32 %v849_v3, %v848_v63  ;;  %v952_v62 = vld [vmem:[%s1983_s2 + $0xa0] sm:$0xff] (!%p1275_p10)  ;;  %v953_v63 = vld [vmem:[%s1983_s2 + $0xa8] sm:$0xff] (!%p1275_p10) }
 0x148   : > { %v837_v8 = vadd.f32 %v836_v4, %v835_v0  ;;  %v863_v9 = vadd.f32 %v862_v5, %v861_v1  ;;  %v1390_v0 = vpack.c.bf16 (!%p1275_p10), %v967_v61, %v966_v59  ;;  %v1360_v1 = vpack.c.bf16 (!%p1275_p10), %v953_v63, %v952_v62  ;;  %v936_v2 = vld [vmem:[%s1983_s2 + $0x20] sm:$0xff] (!%p1275_p10)  ;;  %v937_v3 = vld [vmem:[%s1983_s2 + $0x28] sm:$0xff] (!%p1275_p10)  ;;  %1389 = vmatprep.subr.bf16.mxu1 (!%p1275_p10), %v1388_v60  ;;  %v962_v59 = vld [vmem:[%s1983_s2 + $0xf0] sm:$0xff] (!%p1275_p10) }
 0x149   : > { %v825_v10 = vrot.slane %v824_v6, 2  ;;  %v851_v11 = vrot.slane %v850_v7, 2  ;;  %v984_v4 = vld [vmem:[%s1983_s2 + $0x1a0] sm:$0xff] (!%p1275_p10)  ;;  %v985_v5 = vld [vmem:[%s1983_s2 + $0x1a8] sm:$0xff] (!%p1275_p10)  ;;  %v963_v60 = vld [vmem:[%s1983_s2 + $0xf8] sm:$0xff] (!%p1275_p10) }
 0x14a   : > { %v838_v15 = vrot.slane %v837_v8, 2  ;;  %v864_v16 = vrot.slane %v863_v9, 2  ;;  %1391 = vmatpush3.bf16.msra.mxu1 (!%p1275_p10), %v1390_v0  ;;  %v977_v58 = vld [vmem:[%s1983_s2 + $0x168] sm:$0xff] (!%p1275_p10)  ;;  %v994_v62 = vld [vmem:[%s1983_s2 + $0x1f0] sm:$0xff] (!%p1275_p10)  ;;  %v995_v63 = vld [vmem:[%s1983_s2 + $0x1f8] sm:$0xff] (!%p1275_p10)  ;;  %v1378_v0 = vpack.c.bf16 (!%p1275_p10), %v945_v54, %v944_v51 }
 0x14b   : > { %v826_v17 = vadd.f32 %v825_v10, %v824_v6  ;;  %v852_v18 = vadd.f32 %v851_v11, %v850_v7  ;;  %v968_v6 = vld [vmem:[%s1983_s2 + $0x120] sm:$0xff] (!%p1275_p10)  ;;  %v969_v7 = vld [vmem:[%s1983_s2 + $0x128] sm:$0xff] (!%p1275_p10)  ;;  %v954_v10 = vld [vmem:[%s1983_s2 + $0xb0] sm:$0xff] (!%p1275_p10) }
 0x14c   : > { %v839_v19 = vadd.f32 %v838_v15, %v837_v8  ;;  %v865_v20 = vadd.f32 %v864_v16, %v863_v9  ;;  %v1362_v8 = vpack.c.bf16 (!%p1275_p10), %v937_v3, %v936_v2  ;;  %v1392_v9 = vpack.c.bf16 (!%p1275_p10), %v985_v5, %v984_v4  ;;  %v955_v11 = vld [vmem:[%s1983_s2 + $0xb8] sm:$0xff] (!%p1275_p10)  ;;  %v938_v15 = vld [vmem:[%s1983_s2 + $0x30] sm:$0xff] (!%p1275_p10) }
 0x14d   : > { %v827_v21 = vrot.slane %v826_v17, 1  ;;  %v853_v22 = vrot.slane %v852_v18, 1  ;;  %v1394_v16 = vpack.c.bf16 (!%p1275_p10), %v969_v7, %v968_v6  ;;  %v1380_v4 = vpack.c.bf16 (!%p1275_p10), %v963_v60, %v962_v59  ;;  %v946_v5 = vld [vmem:[%s1983_s2 + $0x70] sm:$0xff] (!%p1275_p10)  ;;  %v947_v6 = vld [vmem:[%s1983_s2 + $0x78] sm:$0xff] (!%p1275_p10) }
 0x14e   : > { %v840_v24 = vrot.slane %v839_v19, 1  ;;  %v866_v25 = vrot.slane %v865_v20, 1  ;;  %1393 = vmatprep.subr.bf16.mxu1 (!%p1275_p10), %v1392_v9  ;;  %v1412_v7 = vpack.c.bf16 (!%p1275_p10), %v995_v63, %v994_v62  ;;  %v979_v9 = vld [vmem:[%s1983_s2 + $0x178] sm:$0xff] (!%p1275_p10) }
 0x14f   : > { %v828_v26 = vadd.f32 %v827_v21, %v826_v17  ;;  %v854_v27 = vadd.f32 %v853_v22, %v852_v18  ;;  %v1364_v17 = vpack.c.bf16 (!%p1275_p10), %v955_v11, %v954_v10  ;;  %v939_v18 = vld [vmem:[%s1983_s2 + $0x38] sm:$0xff] (!%p1275_p10)  ;;  %v970_v22 = vld [vmem:[%s1983_s2 + $0x130] sm:$0xff] (!%p1275_p10)  ;;  %1395 = vmatpush3.bf16.msra.mxu1 (!%p1275_p10), %v1394_v16 }
 0x150   : > { %v841_v28 = vadd.f32 %v840_v24, %v839_v19  ;;  %v867_v29 = vadd.f32 %v866_v25, %v865_v20  ;;  %v986_v19 = vld [vmem:[%s1983_s2 + $0x1b0] sm:$0xff] (!%p1275_p10)  ;;  %v987_v20 = vld [vmem:[%s1983_s2 + $0x1b8] sm:$0xff] (!%p1275_p10)  ;;  %v956_v25 = vld [vmem:[%s1983_s2 + $0xc0] sm:$0xff] (!%p1275_p10) }
 0x151   : > { %v1396_v21 = vpack.c.bf16 (!%p1275_p10), %v987_v20, %v986_v19  ;;  %v971_v24 = vld [vmem:[%s1983_s2 + $0x138] sm:$0xff] (!%p1275_p10)  ;;  %v1276_v19 = vld [vmem:[%s1984_s3] ss:$0 sm:$0xff] (!%p1275_p10) }
 0x152   : > { %v893_v30 = vcombine.low %v828_v26, %v841_v28  ;;  %v894_v31 = vcombine.low %v854_v27, %v867_v29  ;;  %v957_v26 = vld [vmem:[%s1983_s2 + $0xc8] sm:$0xff] (!%p1275_p10)  ;;  %v1366_v27 = vpack.c.bf16 (!%p1275_p10), %v939_v18, %v938_v15  ;;  %v988_v28 = vld [vmem:[%s1983_s2 + $0x1c0] sm:$0xff] (!%p1275_p10)  ;;  %v1382_v15 = vpack.c.bf16 (!%p1275_p10), %v947_v6, %v946_v5 }
 0x153   : > { %v989_v29 = vld [vmem:[%s1983_s2 + $0x1c8] sm:$0xff] (!%p1275_p10)  ;;  %1397 = vmatprep.subr.bf16.mxu1 (!%p1275_p10), %v1396_v21 }
 0x154   : > { %v901_v32 = vrot.slane %v893_v30, %v1725_v14  ;;  %v908_v33 = vrot.slane %v894_v31, %v1725_v14  ;;  %v1398_v30 = vpack.c.bf16 (!%p1275_p10), %v971_v24, %v970_v22  ;;  %v1368_v31 = vpack.c.bf16 (!%p1275_p10), %v957_v26, %v956_v25 }
 0x156   : > { %v909_v34 = vcombine.low %v901_v32, %v908_v33  ;;  %v940_v32 = vld [vmem:[%s1983_s2 + $0x40] sm:$0xff] (!%p1275_p10)  ;;  %v941_v33 = vld [vmem:[%s1983_s2 + $0x48] sm:$0xff] (!%p1275_p10)  ;;  %1399 = vmatpush3.bf16.msra.mxu1 (!%p1275_p10), %v1398_v30 }
 0x158   : > { %v914_v35 = vrot.slane %v909_v34, 7  ;;  %v972_v34 = vld [vmem:[%s1983_s2 + $0x140] sm:$0xff] (!%p1275_p10) }
 0x15a   : > { %v916_v36 = vsel %vm915_vm1, %v914_v35, %v892_v23  ;;  %929 = sbr.rel (%p1275_p10) target bundleno = 600 (0x258), region = 82  ;;  %v933_v23 = vld [vmem:[%s1983_s2 + $0x8] sm:$0xff] (!%p1275_p10) }
 0x15b   : > { %v918_v38 = vsel %vm917_vm2, %v914_v35, %v916_v36  ;;  %v1354_v46 = vpack.c.bf16 (!%p1275_p10), %v933_v23, %v932_v12  ;;  %v973_v36 = vld [vmem:[%s1983_s2 + $0x148] sm:$0xff] (!%p1275_p10)  ;;  %v942_v12 = vld [vmem:[%s1983_s2 + $0x50] sm:$0xff] (!%p1275_p10) }
 0x15c   : > { %v920_v39 = vsel %vm919_vm3, %v914_v35, %v918_v38  ;;  %v959_v38 = vld [vmem:[%s1983_s2 + $0xd8] sm:$0xff] (!%p1275_p10)  ;;  %v1402_v42 = vpack.c.bf16 (!%p1275_p10), %v973_v36, %v972_v34  ;;  %v974_v23 = vld [vmem:[%s1983_s2 + $0x150] sm:$0xff] (!%p1275_p10)  ;;  %v1374_v50 = vpack.c.bf16 (!%p1275_p10), %v943_v13, %v942_v12 }
 0x15d   : > { %v922_v40 = vsel %vm921_vm4, %v914_v35, %v920_v39  ;;  %1355 = vmatpush3.bf16.msra.mxu0 (!%p1275_p10), %v1354_v46  ;;  %v1400_v35 = vpack.c.bf16 (!%p1275_p10), %v989_v29, %v988_v28  ;;  %v990_v39 = vld [vmem:[%s1983_s2 + $0x1d0] sm:$0xff] (!%p1275_p10)  ;;  %v960_v46 = vld [vmem:[%s1983_s2 + $0xe0] sm:$0xff] (!%p1275_p10)  ;;  %v1406_v52 = vpack.c.bf16 (!%p1275_p10), %v975_v45, %v974_v23 }
 0x15e   : > { %v924_v41 = vadd.f32 %v922_v40, %v763_v37  ;;  %1357 = vmatprep.subr.bf16.mxu0 (!%p1275_p10), %v1356_v55  ;;  %v958_v37 = vld [vmem:[%s1983_s2 + $0xd0] sm:$0xff] (!%p1275_p10)  ;;  %v991_v40 = vld [vmem:[%s1983_s2 + $0x1d8] sm:$0xff] (!%p1275_p10)  ;;  %v1376_v53 = vpack.c.bf16 (!%p1275_p10), %v961_v47, %v960_v46  ;;  %v976_v55 = vld [vmem:[%s1983_s2 + $0x160] sm:$0xff] (!%p1275_p10) }
 0x15f   : > { %v1372_v43 = vpack.c.bf16 (!%p1275_p10), %v959_v38, %v958_v37  ;;  %1401 = vmatprep.subr.bf16.mxu1 (!%p1275_p10), %v1400_v35  ;;  %v1404_v44 = vpack.c.bf16 (!%p1275_p10), %v991_v40, %v990_v39  ;;  %v1410_v3 = vpack.c.bf16 (!%p1275_p10), %v977_v58, %v976_v55 }
 0x160   : > { %925 = vst [vmem:[#allocation2] sm:$0xff] %v924_v41  ;;  %v1370_v41 = vpack.c.bf16 (!%p1275_p10), %v941_v33, %v940_v32  ;;  %1403 = vmatpush3.bf16.msra.mxu1 (!%p1275_p10), %v1402_v42 }
 0x161   : > { %1359 = vmatpush3.bf16.msra.mxu0 %v1358_v56  ;;  %1405 = vmatprep.subr.bf16.mxu1 %v1404_v44 }
 0x162   : > { %1361 = vmatprep.subr.bf16.mxu0 %v1360_v1 }
 0x164   : > { %1407 = vmatpush3.bf16.msra.mxu1 %v1406_v52 }
 0x165   : > { %1363 = vmatpush3.bf16.msra.mxu0 %v1362_v8  ;;  %1409 = vmatprep.subr.bf16.mxu1 %v1408_v57  ;;  %v978_v8 = vld [vmem:[%s1983_s2 + $0x170] sm:$0xff] }
 0x166   : > { %1365 = vmatprep.subr.bf16.mxu0 %v1364_v17  ;;  %v1414_v17 = vpack.c.bf16 %v979_v9, %v978_v8 }
 0x167   : > { %v930_v56 = vld [vmem:[#allocation2] sm:$0xff] }
 0x168   : > { %v931_v61 = vmul.f32 0.00390625, %v930_v56  ;;  %1411 = vmatpush3.bf16.msra.mxu1 %v1410_v3 }
 0x169   : > { %1367 = vmatpush3.bf16.msra.mxu0 %v1366_v27  ;;  %1413 = vmatprep.subr.bf16.mxu1 %v1412_v7 }
 0x16a   : > { %1369 = vmatprep.subr.bf16.mxu0 %v1368_v31  ;;  %v1011_v1 = vrot.slane %v931_v61, %v1725_v14  ;;  %v1004_v2 = vcombine.high %v931_v61, %v931_v61 }
 0x16c   : > { %v1019_v10 = vcombine.high %v1011_v1, %v1011_v1  ;;  %v1018_v11 = vrot.slane %v1004_v2, %v1725_v14  ;;  %1415 = vmatpush3.bf16.msra.mxu1 %v1414_v17 }
 0x16d   : > { %1371 = vmatpush3.bf16.msra.mxu0 %v1370_v41 }
 0x16e   : > { %1373 = vmatprep.subr.bf16.mxu0 %v1372_v43  ;;  %1089 = vmatprep.mubr.f32.mxu0 %v1019_v10  ;;  %v1020_v16 = vcombine.high %v1018_v11, %v1018_v11 }
 0x170   : > { %1159 = vmatprep.mubr.f32.mxu1 %v1020_v16 }
 0x171   : > { %1375 = vmatpush3.bf16.msra.mxu0 %v1374_v50  ;;  %1160 = vmatmul.mubr.f32.vlgmr.msra.gmra.mrb[0].mxu1 %v1018_v11 }
 0x172   : > { %1377 = vmatprep.subr.bf16.mxu0 %v1376_v53 }
 0x175   : > { %1379 = vmatpush3.bf16.msra.mxu0 %v1378_v0 }
 0x176   : > { %1381 = vmatprep.subr.bf16.mxu0 %v1380_v4 }
 0x179   : > { %1383 = vmatpush3.bf16.msra.mxu0 %v1382_v15 }
 0x17c   : > { %1090 = vmatmul.mubr.f32.vlgmr.msra.gmra.mrb[0].mxu0 %v1011_v1 }
 0x244   : > { %v1349_v14 = vpop.f32.mrb[0].mxu1 }
 0x245   : > { %v1350_v22 = vpop.f32.mrb[1].mxu1 }
 0x246   : > { %v1351_v24 = vadd.f32 %v1350_v22, %v1349_v14 }
 0x24f   : > { %v1314_v18 = vpop.f32.mrb[0].mxu0 }
 0x250   : > { %v1315_v20 = vpop.f32.mrb[1].mxu0 }
 0x251   : > { %v1316_v21 = vadd.f32 %v1315_v20, %v1314_v18 }
 0x253   : > { %v1092_v25 = vadd.f32 %v1316_v21, %v1276_v19 }
 0x255   : > { %v1162_v26 = vadd.f32 %v1351_v24, %v1092_v25 }
 0x257   : > { %1165 = vst [vmem:[#allocation4] sm:$0x3] %v1162_v26 }
 0x258 PF: > { %p1940_p11 = scmp.eq.s32.totalorder %s1234_s20, 3  ;;  %s1539_s8 = smov [#allocation4]  }
 0x259   : > { %s1175_s9 = sshll.u32 %s1539_s8, 4  ;;  %s1176_s9 = int_to_ptr.vmem [resolvable:$true] %s1175_s9 }
 0x25a   : > { %s1466_s10 = scalar_lea.vmem %s1176_s9, 32  ;;  %p1473_p1 = scmp.lt.s32.totalorder %s1176_s9, %s1176_s9 }
 0x25b   : > { %p1467_p12 = scmp.ne.s32.totalorder %s1176_s9, %s1466_s10  ;;  %p1474_p2 = scmp.lt.s32.totalorder %s1466_s10, %s1466_s10 }
 0x25d   : > { %p1468_p13 = pnand %p1467_p12, %p1940_p11  ;;  %p1475_p3 = por %p1474_p2, %p1473_p1 }
 0x25f   : > { %p1469_p0 = pneg %p1468_p13 }
 0x261   : > { %p1476_p4 = pnand %p1475_p3, %p1469_p0 }
 0x263   : > { %1479 = shalt.err (!%p1476_p4)
}
 0x264   : > { %s1480_s20 = scalar_lea.hbm %s1985_s4, 32 }
 0x265   : > { %p1481_p5 = scmp.ne.s32.totalorder %s1985_s4, %s1480_s20  ;;  %p1486_p8 = scmp.lt.u32.totalorder %s1480_s20, %s1985_s4 }
 0x267   : > { %p1482_p6 = pnand %p1481_p5, %p1940_p11 }
 0x269   : > { %p1483_p7 = pneg %p1482_p6 }
 0x26b   : > { %p1488_p9 = pnand %p1486_p8, %p1483_p7 }
 0x26d   : > { %1491 = shalt.err (!%p1488_p9)
}
 0x26e   : > { %1417 = dma.vmem_to_hbm [thread:$0]  (%p1940_p11), %s1176_s9, 32, %s1985_s4, [#allocation5]  }
 0x26f   : > { %1513 = dma.done.wait (%p1940_p11), [#allocation5], 32  }
 0x270   : > { %1515 = vsyncadd (%p1940_p11), [#allocation5], 4294967264 }
 0x271 PF: > { %s15_s19 = sadd.s32 1, %s1534_s19   ;;  %s1987_s15 = smov %s1522_s16 }
 0x272   : > { %p12_p10 = scmp.ge.s32.totalorder %s15_s19, 6   ;;  %s1988_s16 = smov %s1601_s24 }
 0x273   : > { %s1989_s17 = smov %s1530_s18  ;;  %s1990_s18 = smov %s1992_s21 }
 0x274   :  { %14 = sbr.rel (!%p12_p10) target bundleno = 3 (0x3), region = 115 }
 0x27b   :  { %1188 = vsyncpa [#allocation5], 1 }
 0x27c   :  { %1190 = vsyncpa [#allocation5 + $0x1], 1 }

</bundles_post_ra>
